<compile_context>
chip_gen: v7x
topology: tpu7x:2x2x1
jax: 0.10.0
libtpu: 0.0.40
codegen_flags: <defaults>
</compile_context>

<pallas_src>
import functools

import jax
import jax.numpy as jnp
from jax.experimental import pallas as pl
from jax.experimental.pallas import tpu as pltpu

EPS = 1e-5
_LANE_TILE = 512                      # L-tile target (multiple of 128) for large L
_VMEM_LIMIT = 32 * 1024 * 1024        # safe on v5e/v6e (128 MiB) and v7x (64 MiB) VMEM
_SMALL_CONV_THRESHOLD = 4096          # c_in * c_out below this -> VPU FMA path


# ----------------------------- kernels -------------------------------------


def _bn_relu_kernel(x_ref, scale_ref, shift_ref, o_ref):
    """disable_conv=True path.  x:(C, TL)  scale/shift:(C, 1)  o:(C, TL)."""
    x = x_ref[...].astype(jnp.float32)
    h = x * scale_ref[...] + shift_ref[...]
    o_ref[...] = jnp.maximum(h, 0.0).astype(o_ref.dtype)


def _bn_relu_conv_vpu_kernel(x_ref, scale_ref, shift_ref, w_ref, o_ref, *, c_in):
    """Tiny-channel path: 1x1 conv as unrolled VPU broadcast FMAs (no MXU).

    x:(C_in, TL)  scale/shift:(C_in, 1)  w:(C_out, C_in)  o:(C_out, TL)
    """
    x = x_ref[...].astype(jnp.float32)
    h = jnp.maximum(x * scale_ref[...] + shift_ref[...], 0.0)      # (C_in, TL)
    w = w_ref[...].astype(jnp.float32)                             # (C_out, C_in)
    acc = w[:, 0:1] * h[0:1, :]                                    # (C_out, TL)
    for c in range(1, c_in):                                       # unrolled (small c_in)
        acc = acc + w[:, c:c + 1] * h[c:c + 1, :]
    o_ref[...] = acc.astype(o_ref.dtype)


def _bn_relu_conv_mxu_kernel(x_ref, scale_ref, shift_ref, w_ref, o_ref):
    """Large-channel path: bf16 MXU matmul with f32 accumulation.

    x:(C_in, TL)  scale/shift:(C_in, 1)  w:(C_out, C_in) bf16  o:(C_out, TL)
    """
    x = x_ref[...].astype(jnp.float32)
    h = jnp.maximum(x * scale_ref[...] + shift_ref[...], 0.0)      # f32 BN/ReLU
    o_ref[...] = jnp.dot(
        w_ref[...],                                                # bf16
        h.astype(jnp.bfloat16),                                    # bf16 -> full-rate MXU
        preferred_element_type=jnp.float32,
    ).astype(o_ref.dtype)


# ----------------------------- wrapper --------------------------------------


def bottleneck_block(x, gamma, beta, conv_w=None, disable_conv=False):
    """x: (N, C_in, L), gamma/beta: (C_in,), conv_w: (C_out, C_in, 1)."""
    n, c_in, length = x.shape
    xf = x.astype(jnp.float32)

    # Stage 1: global (training-mode) BN stats, folded with affine into scale/shift.
    # Two-pass variance (biased) in f32 to avoid E[x^2]-mean^2 cancellation.
    mean = jnp.mean(xf, axis=(0, 2))
    var = jnp.mean(jnp.square(xf - mean[None, :, None]), axis=(0, 2))
    scale = gamma.astype(jnp.float32) * jax.lax.rsqrt(var + EPS)
    shift = beta.astype(jnp.float32) - mean * scale
    scale = scale.reshape(c_in, 1)
    shift = shift.reshape(c_in, 1)

    # L tile: full L when small, else a 128-multiple tile (ragged edge handled by Pallas).
    tile_l = length if length <= _LANE_TILE else _LANE_TILE
    grid = (n, pl.cdiv(length, tile_l))

    cparams = pltpu.CompilerParams(
        dimension_semantics=("parallel", "parallel"),   # v7x: shard across both TCs
        vmem_limit_bytes=_VMEM_LIMIT,
    )

    x_spec = pl.BlockSpec((None, c_in, tile_l), lambda i, j: (i, 0, j))
    vec_spec = pl.BlockSpec((c_in, 1), lambda i, j: (0, 0))         # resident params

    if disable_conv:
        return pl.pallas_call(
            _bn_relu_kernel,
            out_shape=jax.ShapeDtypeStruct((n, c_in, length), x.dtype),
            grid=grid,
            in_specs=[x_spec, vec_spec, vec_spec],
            out_specs=pl.BlockSpec((None, c_in, tile_l), lambda i, j: (i, 0, j)),
            compiler_params=cparams,
        )(x, scale, shift)

    c_out = conv_w.shape[0]
    w2d = conv_w.reshape(c_out, c_in)
    w_spec = pl.BlockSpec((c_out, c_in), lambda i, j: (0, 0))        # resident weight
    out_spec = pl.BlockSpec((None, c_out, tile_l), lambda i, j: (i, 0, j))

    if c_in * c_out <= _SMALL_CONV_THRESHOLD:
        kernel = functools.partial(_bn_relu_conv_vpu_kernel, c_in=c_in)
        w_in = w2d.astype(jnp.float32)
    else:
        kernel = _bn_relu_conv_mxu_kernel
        w_in = w2d.astype(jnp.bfloat16)

    return pl.pallas_call(
        kernel,
        out_shape=jax.ShapeDtypeStruct((n, c_out, length), x.dtype),
        grid=grid,
        in_specs=[x_spec, vec_spec, vec_spec, w_spec],
        out_specs=out_spec,
        compiler_params=cparams,
    )(x, scale, shift, w_in)


# ----------------------------- reference & test ------------------------------


def _reference(x, gamma, beta, conv_w, disable_conv, matmul_dtype=jnp.float32):
    """Pure-JAX reference of the PyTorch forward (training-mode BN)."""
    mean = jnp.mean(x, axis=(0, 2), keepdims=True)
    var = jnp.mean(jnp.square(x - mean), axis=(0, 2), keepdims=True)
    h = (x - mean) * jax.lax.rsqrt(var + EPS)
    h = h * gamma[None, :, None] + beta[None, :, None]
    h = jnp.maximum(h, 0.0)
    if disable_conv:
        return h
    w = conv_w.reshape(conv_w.shape[0], conv_w.shape[1])            # (C_out, C_in)
    return jnp.einsum(
        "oc,ncl->nol",
        w.astype(matmul_dtype),
        h.astype(matmul_dtype),
        preferred_element_type=jnp.float32,
    ).astype(x.dtype)


if __name__ == "__main__":
    key = jax.random.PRNGKey(0)
    k_x, k_g, k_b, k_w, k_x2, k_w2 = jax.random.split(key, 6)

    # --- small config (exercises the VPU small-channel conv path) ---
    N, C_IN, L, C_OUT = 2, 4, 16, 8
    x = jax.random.normal(k_x, (N, C_IN, L), dtype=jnp.float32)
    gamma = 1.0 + 0.1 * jax.random.normal(k_g, (C_IN,), dtype=jnp.float32)
    beta = 0.1 * jax.random.normal(k_b, (C_IN,), dtype=jnp.float32)
    conv_w = jax.random.normal(k_w, (C_OUT, C_IN, 1), dtype=jnp.float32) * (1.0 / C_IN ** 0.5)

    out = jax.block_until_ready(bottleneck_block(x, gamma, beta, conv_w, disable_conv=False))
    ref = _reference(x, gamma, beta, conv_w, disable_conv=False)
    assert out.shape == (N, C_OUT, L)
    assert jnp.allclose(out, ref, rtol=1e-2, atol=1e-2)

    # --- disable_conv path (BN -> ReLU only) ---
    out2 = jax.block_until_ready(bottleneck_block(x, gamma, beta, disable_conv=True))
    ref2 = _reference(x, gamma, beta, conv_w, disable_conv=True)
    assert out2.shape == (N, C_IN, L)
    assert jnp.allclose(out2, ref2, rtol=1e-2, atol=1e-2)

    # --- larger-channel config (exercises the bf16 MXU conv path) ---
    N2, C_IN2, L2, C_OUT2 = 2, 128, 256, 128
    x2 = jax.random.normal(k_x2, (N2, C_IN2, L2), dtype=jnp.float32)
    gamma2 = jnp.ones((C_IN2,), jnp.float32)
    beta2 = jnp.zeros((C_IN2,), jnp.float32)
    conv_w2 = jax.random.normal(k_w2, (C_OUT2, C_IN2, 1), dtype=jnp.float32) * (1.0 / C_IN2 ** 0.5)

    out3 = jax.block_until_ready(bottleneck_block(x2, gamma2, beta2, conv_w2, disable_conv=False))
    ref3 = _reference(x2, gamma2, beta2, conv_w2, disable_conv=False, matmul_dtype=jnp.bfloat16)
    assert out3.shape == (N2, C_OUT2, L2)
    assert jnp.allclose(out3, ref3, rtol=1e-2, atol=1e-2)

    print("KERNEL_OK")
</pallas_src>

<mosaic_0001>
module attributes {stable_mosaic.version = 11 : i64} {
  func.func @_bn_relu_conv_vpu_kernel(%arg0: i32, %arg1: i32, %arg2: memref<1x4x16xf32, #tpu.memory_space<vmem>>, %arg3: memref<4x1xf32, #tpu.memory_space<vmem>>, %arg4: memref<4x1xf32, #tpu.memory_space<vmem>>, %arg5: memref<8x4xf32, #tpu.memory_space<vmem>>, %arg6: memref<1x8x16xf32, #tpu.memory_space<vmem>>) attributes {dimension_semantics = [#tpu.dimension_semantics<parallel>, #tpu.dimension_semantics<parallel>], iteration_bounds = array<i64: 2, 1>, scalar_prefetch = 0 : i64, scratch_operands = 0 : i64, tpu.core_type = #tpu.core_type<tc>, window_params = [{transform_indices = @transform_0, window_bounds = array<i64: 1, 4, 16>}, {pipeline_mode = #tpu.pipeline_mode<synchronous>, transform_indices = @transform_1, window_bounds = array<i64: 4, 1>}, {pipeline_mode = #tpu.pipeline_mode<synchronous>, transform_indices = @transform_2, window_bounds = array<i64: 4, 1>}, {pipeline_mode = #tpu.pipeline_mode<synchronous>, transform_indices = @transform_3, window_bounds = array<i64: 8, 4>}, {transform_indices = @transform_4, window_bounds = array<i64: 1, 8, 16>}]} {
    %c0 = arith.constant 0 : index
    %c0_0 = arith.constant 0 : index
    %c0_1 = arith.constant 0 : index
    %0 = vector.load %arg2[%c0, %c0_0, %c0_1] : memref<1x4x16xf32, #tpu.memory_space<vmem>>, vector<1x4x16xf32>
    %1 = vector.shape_cast %0 : vector<1x4x16xf32> to vector<4x16xf32>
    %c0_2 = arith.constant 0 : index
    %c0_3 = arith.constant 0 : index
    %2 = vector.load %arg3[%c0_2, %c0_3] : memref<4x1xf32, #tpu.memory_space<vmem>>, vector<4x1xf32>
    %3 = vector.broadcast %2 : vector<4x1xf32> to vector<4x16xf32>
    %4 = arith.mulf %1, %3 : vector<4x16xf32>
    %c0_4 = arith.constant 0 : index
    %c0_5 = arith.constant 0 : index
    %5 = vector.load %arg4[%c0_4, %c0_5] : memref<4x1xf32, #tpu.memory_space<vmem>>, vector<4x1xf32>
    %6 = vector.broadcast %5 : vector<4x1xf32> to vector<4x16xf32>
    %7 = arith.addf %4, %6 : vector<4x16xf32>
    %cst = arith.constant 0.000000e+00 : f32
    %8 = vector.broadcast %cst : f32 to vector<4x16xf32>
    %9 = arith.maximumf %7, %8 : vector<4x16xf32>
    %c0_6 = arith.constant 0 : index
    %c0_7 = arith.constant 0 : index
    %10 = vector.load %arg5[%c0_6, %c0_7] : memref<8x4xf32, #tpu.memory_space<vmem>>, vector<8x4xf32>
    %11 = vector.extract_strided_slice %10 {offsets = [0, 0], sizes = [8, 1], strides = [1, 1]} : vector<8x4xf32> to vector<8x1xf32>
    %12 = vector.extract_strided_slice %9 {offsets = [0, 0], sizes = [1, 16], strides = [1, 1]} : vector<4x16xf32> to vector<1x16xf32>
    %13 = vector.broadcast %11 : vector<8x1xf32> to vector<8x16xf32>
    %14 = vector.broadcast %12 : vector<1x16xf32> to vector<8x16xf32>
    %15 = arith.mulf %13, %14 : vector<8x16xf32>
    %16 = vector.extract_strided_slice %10 {offsets = [0, 1], sizes = [8, 1], strides = [1, 1]} : vector<8x4xf32> to vector<8x1xf32>
    %17 = vector.extract_strided_slice %9 {offsets = [1, 0], sizes = [1, 16], strides = [1, 1]} : vector<4x16xf32> to vector<1x16xf32>
    %18 = vector.broadcast %16 : vector<8x1xf32> to vector<8x16xf32>
    %19 = vector.broadcast %17 : vector<1x16xf32> to vector<8x16xf32>
    %20 = arith.mulf %18, %19 : vector<8x16xf32>
    %21 = arith.addf %15, %20 : vector<8x16xf32>
    %22 = vector.extract_strided_slice %10 {offsets = [0, 2], sizes = [8, 1], strides = [1, 1]} : vector<8x4xf32> to vector<8x1xf32>
    %23 = vector.extract_strided_slice %9 {offsets = [2, 0], sizes = [1, 16], strides = [1, 1]} : vector<4x16xf32> to vector<1x16xf32>
    %24 = vector.broadcast %22 : vector<8x1xf32> to vector<8x16xf32>
    %25 = vector.broadcast %23 : vector<1x16xf32> to vector<8x16xf32>
    %26 = arith.mulf %24, %25 : vector<8x16xf32>
    %27 = arith.addf %21, %26 : vector<8x16xf32>
    %28 = vector.extract_strided_slice %10 {offsets = [0, 3], sizes = [8, 1], strides = [1, 1]} : vector<8x4xf32> to vector<8x1xf32>
    %29 = vector.extract_strided_slice %9 {offsets = [3, 0], sizes = [1, 16], strides = [1, 1]} : vector<4x16xf32> to vector<1x16xf32>
    %30 = vector.broadcast %28 : vector<8x1xf32> to vector<8x16xf32>
    %31 = vector.broadcast %29 : vector<1x16xf32> to vector<8x16xf32>
    %32 = arith.mulf %30, %31 : vector<8x16xf32>
    %33 = arith.addf %27, %32 : vector<8x16xf32>
    %c0_8 = arith.constant 0 : index
    %c0_9 = arith.constant 0 : index
    %c0_10 = arith.constant 0 : index
    %34 = vector.load %arg6[%c0_8, %c0_9, %c0_10] : memref<1x8x16xf32, #tpu.memory_space<vmem>>, vector<1x8x16xf32>
    %35 = vector.shape_cast %34 : vector<1x8x16xf32> to vector<8x16xf32>
    %36 = vector.shape_cast %33 : vector<8x16xf32> to vector<1x8x16xf32>
    tpu.vector_store %arg6[%c0_8, %c0_9, %c0_10], %36 {strides = array<i32>} : memref<1x8x16xf32, #tpu.memory_space<vmem>>, vector<1x8x16xf32>,
    return
  }
  func.func @transform_0(%arg0: i32, %arg1: i32) -> (i32, i32, i32) {
    %c0_i32 = arith.constant 0 : i32
    %c0_i32_0 = arith.constant 0 : i32
    return %arg0, %c0_i32, %arg1 : i32, i32, i32
  }
  func.func @transform_1(%arg0: i32, %arg1: i32) -> (i32, i32) {
    %c0_i32 = arith.constant 0 : i32
    %c0_i32_0 = arith.constant 0 : i32
    %c0_i32_1 = arith.constant 0 : i32
    return %c0_i32, %c0_i32_0 : i32, i32
  }
  func.func @transform_2(%arg0: i32, %arg1: i32) -> (i32, i32) {
    %c0_i32 = arith.constant 0 : i32
    %c0_i32_0 = arith.constant 0 : i32
    %c0_i32_1 = arith.constant 0 : i32
    return %c0_i32, %c0_i32_0 : i32, i32
  }
  func.func @transform_3(%arg0: i32, %arg1: i32) -> (i32, i32) {
    %c0_i32 = arith.constant 0 : i32
    %c0_i32_0 = arith.constant 0 : i32
    %c0_i32_1 = arith.constant 0 : i32
    return %c0_i32, %c0_i32_0 : i32, i32
  }
  func.func @transform_4(%arg0: i32, %arg1: i32) -> (i32, i32, i32) {
    %c0_i32 = arith.constant 0 : i32
    %c0_i32_0 = arith.constant 0 : i32
    return %arg0, %c0_i32, %arg1 : i32, i32, i32
  }
}

</mosaic_0001>

<bundles_post_ra>
// kernel: tpu_custom_call.1
= control target key start
LH: loop header
LB: loop body
LE: loop exit
PB: predicated region body
PF: predicated region fallthrough
CT: control target
= control target key end

     0   :  { %9 = vsyncpa [#allocation3], 0  ;;  %s670_s0 = inlined_call_operand.vmem [shape: f32[2,4,16], index: 0, kind: input, shape index: {}]   ;;  %s671_s1 = inlined_call_operand.vmem [shape: f32[4,1], index: 1, kind: input, shape index: {}]   ;;  %s672_s2 = inlined_call_operand.vmem [shape: f32[4,1], index: 2, kind: input, shape index: {}]   ;;  %s673_s3 = inlined_call_operand.vmem [shape: f32[8,4], index: 3, kind: input, shape index: {}]   ;;  %s674_s4 = inlined_call_operand.hbm [shape: f32[2,8,16], index: 4, kind: output, shape index: {}]  }
   0x1   :  { %11 = vsyncpa [#allocation3 + $0x1], 0  ;;  %s549_s15 = smov 0   ;;  %s551_s16 = smov 0  }
   0x2   :  { %s553_s17 = smov 0   ;;  %s555_s18 = smov 0  }
   0x3   :  { %s557_s19 = smov 0   ;;  %s559_s20 = smov 0  }
   0x4 LB: > { %s363_s21 = sadd.s32 4294967295, %s517_s20   ;;  %s364_s22 = sadd.s32 4294967294, %s517_s20   ;;  %s517_s20 = sphi %s559_s20, %s17_s20   ;;  %s513_s19 = sphi %s557_s19, %s681_s19   ;;  %s509_s18 = sphi %s555_s18, %s680_s18   ;;  %s505_s17 = sphi %s553_s17, %s679_s17   ;;  %s501_s16 = sphi %s551_s16, %s678_s16   ;;  %s497_s15 = sphi %s549_s15, %s677_s15  }
   0x5   : > { %s29_s23 = sadd.s32 1, %s513_s19  ;;  %s129_s24 = sadd.s32 1, %s505_s17 }
   0x6   : > { %p31_p0 = scmp.ge.s32.totalorder %s29_s23, 2  ;;  %p139_p1 = scmp.ne.s32.totalorder %s505_s17, %s501_s16 }
   0x7   : > { %p140_p2 = scmp.eq.s32.totalorder %s363_s21, 1  ;;  %p145_p3 = scmp.ne.s32.totalorder %s501_s16, %s497_s15 }
   0x8   : > { %s683_s23 = smov (%p31_p0, %s29_s23), 0  ;;  %p146_p5 = scmp.eq.s32.totalorder %s364_s22, 1 }
   0x9   : > { %p589_p4 = por %p140_p2, %p139_p1  ;;  %s124_s26 = ssub.s32 %s513_s19, %s683_s23 }
   0xa   : > { %p367_p6 = scmp.ge.s32.totalorder %s517_s20, 1  ;;  %p127_p7 = scmp.eq.s32.totalorder %s124_s26, 0 }
   0xb   : > { %p596_p8 = por %p146_p5, %p145_p3  ;;  %p183_p9 = scmp.lt.s32.totalorder %s517_s20, 3 }
   0xc   : > { %s602_s28 = scalar_select %p127_p7, %s505_s17, %s129_s24  }
   0xd   : > { %p184_p10 = pnand %p367_p6, %p183_p9 }
   0xe   : > { %v234_v0 = vld [vmem:[%s673_s3] sm:$0xff] (!%p184_p10)  ;;  %v519_v2 = vmov (!%p184_p10), 0   ;;  %v520_v4 = vmov (!%p184_p10), 1   ;;  %v521_v5 = vmov (!%p184_p10), 2   ;;  %v522_v6 = vmov (!%p184_p10), 3   ;;  %p211_p11 = scmp.lt.s32.totalorder (!%p184_p10), %s509_s18, 1 }
   0xf   : > { %187 = sbr.rel (%p184_p10) target bundleno = 176 (0xb0), region = 36  ;;  %v219_v1 = vld [vmem:[%s671_s1] sm:$0xf] (!%p184_p10)  ;;  %434 = vset.pattern.permute.xlu1 (!%p184_p10), %v519_v2  ;;  %433 = vset.pattern.permute.xlu0 (!%p184_p10), %v519_v2  ;;  %v240_v7 = vlaneseq (!%p184_p10)  ;;  %s208_s14 = sand.u32 (!%p184_p10), 1, %s501_s16   ;;  %vm275_vm0 = vcmask (!%p184_p10), 130048  }
  0x10   : > { %237 = vperm.xlu1 (!%p184_p10), %434, %v234_v0   ;;  %222 = vperm.xlu0 (!%p184_p10), %433, %v219_v1   ;;  %v226_v3 = vld [vmem:[%s672_s2] sm:$0xf] (!%p184_p10)  ;;  %s368_s21 = sshll.u32 (!%p184_p10), %s208_s14, 3  ;;  %s371_s22 = sshll.u32 (!%p184_p10), %s509_s18, 7 }
  0x11   : > { %v241_v11 = vshrl.u32 (!%p184_p10), %v240_v7, 7  ;;  %s210_s24 = scalar_lea.vmem (!%p184_p10), [#allocation2], %s368_s21  ;;  %s623_s5 = scalar_lea.hbm (!%p184_p10), %s674_s4, %s371_s22 }
  0x12   : > { %s292_s26 = sshll.u32 (!%p184_p10), %s210_s24, 4  ;;  %s278_s6 = scalar_lea.sflag (!%p184_p10), [#allocation3], %s208_s14  ;;  %s625_s26 = int_to_ptr.vmem [resolvable:$true] %s292_s26 }
  0x13   : > { %v242_v15 = vsub.s32 (!%p184_p10), 0, %v241_v11  ;;  %v251_v16 = vsub.s32 (!%p184_p10), 1, %v241_v11  ;;  %v261_v17 = vsub.s32 (!%p184_p10), 2, %v241_v11  ;;  %v271_v20 = vsub.s32 (!%p184_p10), 3, %v241_v11  ;;  %s439_s7 = scalar_lea.vmem (!%p184_p10), %s625_s26, 128 }
  0x14   : > { %435 = vset.pattern.permute.xlu1 (!%p184_p10), %v520_v4  ;;  %229 = vperm.xlu0 (!%p184_p10), %433, %v226_v3   ;;  %p440_p12 = scmp.ne.s32.totalorder (!%p184_p10), %s625_s26, %s439_s7 }
  0x15   : > { %246 = vperm.xlu1 (!%p184_p10), %435, %v234_v0  }
  0x16   : > { %s212_s9 = scalar_select %p211_p11, %s509_s18, 1 }
  0x17   : > { %p441_p13 = pnand %p440_p12, %p589_p4  ;;  %s523_s18 = smov [#allocation2]  }
  0x18   : > { %436 = vset.pattern.permute.xlu0 %v521_v5  ;;  %s369_s10 = sshll.u32 %s212_s9, 2  ;;  %s443_s8 = sshll.u32 %s523_s18, 4  ;;  %s444_s8 = int_to_ptr.vmem [resolvable:$false] %s443_s8 }
  0x19   : > { %437 = vset.pattern.permute.xlu1 %v522_v6  ;;  %256 = vperm.xlu0 %436, %v234_v0   ;;  %s217_s13 = scalar_lea.vmem %s670_s0, %s369_s10  ;;  %p442_p0 = pneg %p441_p13 }
  0x1a   : > { %266 = vperm.xlu1 %437, %v234_v0   ;;  %v218_v9 = vld [vmem:[%s217_s13] sm:$0xf]  ;;  %s445_s9 = scalar_lea.vmem %s444_s8, 256  ;;  %p446_p1 = scmp.lt.s32.totalorder %s625_s26, %s444_s8 }
  0x1b   : > { %p447_p2 = scmp.lt.s32.totalorder %s445_s9, %s439_s7 }
  0x1d   : > { %438 = vset.pattern.permute.xlu0 %v522_v6  ;;  %p448_p3 = por %p447_p2, %p446_p1 }
  0x1f   : > { %p449_p5 = pnand %p448_p3, %p442_p0 }
  0x8f   : > { %v223_v8 = vpop.permute.xlu0 %222  ;;  %v238_v10 = vpop.permute.xlu1 %237 }
  0x90   : > { %v225_v12 = vmul.f32 %v223_v8, %v218_v9 }
  0x93   : > { %v230_v13 = vpop.permute.xlu0 %229 }
  0x94   : > { %v232_v14 = vadd.f32 %v230_v13, %v225_v12  ;;  %v247_v18 = vpop.permute.xlu1 %246 }
  0x96   : > { %v233_v19 = vmax.f32 %v232_v14, 0.0 }
  0x98   : > { %v243_v21 = vrot.slane %v233_v19, %v242_v15  ;;  %v252_v22 = vrot.slane %v233_v19, %v251_v16  ;;  %v262_v23 = vrot.slane %v233_v19, %v261_v17  ;;  %v257_v24 = vpop.permute.xlu0 %256  ;;  %v272_v27 = vrot.slane %v233_v19, %v271_v20 }
  0x99   : > { %v267_v28 = vpop.permute.xlu1 %266 }
  0x9a   : > { %v244_v25 = vmul.f32 %v243_v21, %v238_v10  ;;  %v253_v26 = vmul.f32 %v252_v22, %v247_v18  ;;  %v263_v30 = vmul.f32 %v262_v23, %v257_v24  ;;  %v273_v31 = vmul.f32 %v272_v27, %v267_v28 }
  0x9c   : > { %v254_v29 = vadd.f32 %v253_v26, %v244_v25 }
  0x9e   : > { %v264_v32 = vadd.f32 %v263_v30, %v254_v29 }
  0xa0   : > { %v274_v33 = vadd.f32 %v273_v31, %v264_v32 }
  0xa2   : > { %276 = vst.msk [vmem:[%s210_s24] sm:$0xff] %vm275_vm0, %v274_v33 }
  0xa3   : > { %452 = shalt.err (!%p449_p5)
}
  0xa4   : > { %s453_s10 = scalar_lea.hbm %s623_s5, 128  ;;  %s457_s13 = scalar_lea.hbm %s674_s4, 256 }
  0xa5   : > { %p454_p6 = scmp.ne.s32.totalorder %s623_s5, %s453_s10  ;;  %p458_p10 = scmp.lt.u32.totalorder %s623_s5, %s674_s4 }
  0xa6   : > { %p459_p11 = scmp.lt.u32.totalorder %s457_s13, %s453_s10  ;;  %p461_p13 = scmp.lt.u32.totalorder %s453_s10, %s623_s5 }
  0xa7   : > { %p455_p7 = pnand %p454_p6, %p589_p4 }
  0xa8   : > { %p460_p12 = por %p459_p11, %p458_p10 }
  0xa9   : > { %p456_p9 = pneg %p455_p7 }
  0xaa   : > { %p462_p0 = por %p461_p13, %p460_p12 }
  0xac   : > { %p463_p1 = pnand %p462_p0, %p456_p9 }
  0xae   : > { %466 = shalt.err (!%p463_p1)
}
  0xaf   : > { %374 = dma.vmem_to_hbm [thread:$0]  (%p589_p4), %s625_s26, 128, %s623_s5, %s278_s6  }
  0xb0 PF: > { %p380_p2 = scmp.ge.s32.totalorder %s517_s20, 2  ;;  %s304_s22 = sand.u32 1, %s497_s15  }
  0xb1   : > { %s305_s24 = scalar_lea.sflag [#allocation3], %s304_s22 }
  0xb2   : > { %p377_p3 = pnand %p380_p2, %p596_p8 }
  0xb4   : > { %492 = dma.done.wait (!%p377_p3), %s305_s24, 128  }
  0xb5   : > { %494 = vsyncadd (!%p377_p3), %s305_s24, 4294967168  ;;  %s17_s20 = sadd.s32 1, %s517_s20   ;;  %s677_s15 = smov %s501_s16 }
  0xb6   : > { %p14_p5 = scmp.ge.s32.totalorder %s17_s20, 4   ;;  %s678_s16 = smov %s505_s17 }
  0xb7   : > { %s679_s17 = smov %s602_s28  ;;  %s680_s18 = smov %s513_s19 }
  0xb8   : > { %s681_s19 = smov %s683_s23  ;;  %16 = sbr.rel (!%p14_p5) target bundleno = 4 (0x4), region = 71 }
  0xbf   :  { %310 = vsyncpa [#allocation3], 1 }
  0xc0   :  { %312 = vsyncpa [#allocation3 + $0x1], 1 }

</bundles_post_ra>
